<compile_context>
chip_gen: v6e
topology: v6e:2x2x1
jax: 0.10.0
libtpu: 0.0.40
codegen_flags: <defaults>
</compile_context>

<pallas_src>
import functools

import jax
import jax.numpy as jnp
from jax.experimental import pallas as pl
from jax.experimental.pallas import tpu as pltpu

LN_EPS = 1e-5  # PyTorch nn.LayerNorm default


def _round_up(x, m):
    return (x + m - 1) // m * m


# ----------------------------------------------------------------------------
# generation-aware sizing (v5e/v6e: 128 MiB VMEM, v7x: 64 MiB)
# ----------------------------------------------------------------------------
def _tpu_vmem_capacity():
    try:
        return int(pltpu.get_tpu_info().vmem_capacity_bytes)
    except Exception:
        return 64 * 1024 * 1024  # conservative (v7x-sized) fallback


_VMEM_CAP = _tpu_vmem_capacity()
if _VMEM_CAP >= 100 * 1024 * 1024:          # v5e / v6e
    _VMEM_LIMIT = 96 * 1024 * 1024
    _MAX_ROW_TILE = 1024
    _MAX_Q_TILE = 512
else:                                        # v7x or unknown
    _VMEM_LIMIT = 48 * 1024 * 1024
    _MAX_ROW_TILE = 512
    _MAX_Q_TILE = 256

_CP = pltpu.CompilerParams(dimension_semantics=("parallel",),
                           vmem_limit_bytes=_VMEM_LIMIT)


# ----------------------------------------------------------------------------
# small helpers (row padding / tiling)
# ----------------------------------------------------------------------------
def _pick_tile(rows, max_tile):
    # 16-row granularity so bf16 blocks respect native (16, 128) packing as well
    return min(max_tile, _round_up(rows, 16))


def _pad_rows(x, rows_padded):
    r = x.shape[0]
    if r == rows_padded:
        return x
    return jnp.pad(x, ((0, rows_padded - r), (0, 0)))


def _row_call(kernel, row_args, const_args, outs, max_tile=None):
    """Row-tiled pallas_call. row_args tiled over rows; const_args resident.

    outs: list of (ncols, dtype) describing each (rows, ncols) output.
    """
    if max_tile is None:
        max_tile = _MAX_ROW_TILE
    rows = row_args[0].shape[0]
    tile = _pick_tile(rows, max_tile)
    rp = _round_up(rows, tile)
    padded = [_pad_rows(a, rp) for a in row_args]
    in_specs = ([pl.BlockSpec((tile, a.shape[1]), lambda i: (i, 0)) for a in row_args]
                + [pl.BlockSpec(a.shape, lambda i: (0, 0)) for a in const_args])
    out_shape = tuple(jax.ShapeDtypeStruct((rp, d), dt) for d, dt in outs)
    out_specs = tuple(pl.BlockSpec((tile, d), lambda i: (i, 0)) for d, _ in outs)
    single = len(outs) == 1
    res = pl.pallas_call(
        kernel,
        grid=(rp // tile,),
        out_shape=out_shape[0] if single else out_shape,
        in_specs=in_specs,
        out_specs=out_specs[0] if single else out_specs,
        compiler_params=_CP,
    )(*padded, *const_args)
    if single:
        return res[:rows]
    return tuple(r[:rows] for r in res)


# ----------------------------------------------------------------------------
# Pallas kernels
# ----------------------------------------------------------------------------
def _linear_kernel(x_ref, w_ref, b_ref, o_ref):
    y = jnp.dot(x_ref[...].astype(jnp.bfloat16), w_ref[...],
                preferred_element_type=jnp.float32) + b_ref[...]
    o_ref[...] = y.astype(o_ref.dtype)


def _linear_mask_kernel(x_ref, m_ref, w_ref, b_ref, o_ref):
    # padding-mask zeroing fused into the value projection (m_ref = keep mask in {0,1})
    y = jnp.dot(x_ref[...].astype(jnp.bfloat16), w_ref[...],
                preferred_element_type=jnp.float32) + b_ref[...]
    o_ref[...] = (y * m_ref[...]).astype(o_ref.dtype)


def _qproj_kernel(*refs, has_pos):
    # fused: (q + pos) -> [sampling-offset | attention-logit] projection -> per-head
    # softmax on the packed lane-dense block (one masked max, one exp, one tiny
    # segment-sum matmul, one approximate reciprocal).
    if has_pos:
        q_ref, pos_ref, w_ref, b_ref, mask_ref, seg_ref, o_ref = refs
        x = q_ref[...].astype(jnp.float32) + pos_ref[...].astype(jnp.float32)
    else:
        q_ref, w_ref, b_ref, mask_ref, seg_ref, o_ref = refs
        x = q_ref[...].astype(jnp.float32)
    y = jnp.dot(x.astype(jnp.bfloat16), w_ref[...],
                preferred_element_type=jnp.float32) + b_ref[...]
    is_attn = mask_ref[...]                               # (1, Wtot), 1.0 on logit cols
    neg = jnp.float32(-1e30)
    m = jnp.max(jnp.where(is_attn > 0, y, neg), axis=-1, keepdims=True)
    e = jnp.exp(jnp.where(is_attn > 0, y - m, neg))       # exactly 0 outside logit cols
    denom = jnp.dot(e, seg_ref[...], preferred_element_type=jnp.float32)
    denom = denom + (1.0 - is_attn)                       # avoid 0 on non-logit cols
    attn = e * pl.reciprocal(denom, approx=True)
    o_ref[...] = jnp.where(is_attn > 0, attn, y).astype(o_ref.dtype)


def _out_add_ln_kernel(a_ref, r_ref, w_ref, b_ref, g_ref, beta_ref, o_ref):
    # fused: output projection -> residual add -> LayerNorm
    y = jnp.dot(a_ref[...].astype(jnp.bfloat16), w_ref[...],
                preferred_element_type=jnp.float32) + b_ref[...]
    z = r_ref[...].astype(jnp.float32) + y
    mu = jnp.mean(z, axis=-1, keepdims=True)
    d = z - mu
    var = jnp.mean(d * d, axis=-1, keepdims=True)
    o_ref[...] = (d * jax.lax.rsqrt(var + LN_EPS) * g_ref[...] + beta_ref[...]).astype(o_ref.dtype)


def _ffn_kernel(x_ref, w1_ref, b1_ref, w2_ref, b2_ref, g_ref, beta_ref, o_ref):
    # fused: linear -> ReLU -> linear -> residual add -> LayerNorm
    x = x_ref[...].astype(jnp.float32)
    h = jnp.dot(x.astype(jnp.bfloat16), w1_ref[...],
                preferred_element_type=jnp.float32) + b1_ref[...]
    h = jnp.maximum(h, 0.0)
    y = jnp.dot(h.astype(jnp.bfloat16), w2_ref[...],
                preferred_element_type=jnp.float32) + b2_ref[...]
    z = x + y
    mu = jnp.mean(z, axis=-1, keepdims=True)
    d = z - mu
    var = jnp.mean(d * d, axis=-1, keepdims=True)
    o_ref[...] = (d * jax.lax.rsqrt(var + LN_EPS) * g_ref[...] + beta_ref[...]).astype(o_ref.dtype)


def _deform_gather_kernel(*refs, n_heads, n_levels):
    """MS-deformable attention core for one (batch, q-tile).

    Per level l the kernel receives:
      idx_ref_l: (1, H, Tq, P4) int32 LEVEL-LOCAL flat corner indices
      w_ref_l:   (1, H, Tq, P4) f32   bilinear * valid * attention weights
      v_ref_l:   (1, Sl, C)     bf16  that level's value slice (zero-padded rows)
    Output o_ref: (1, Tq, C) bf16.

    A sparse per-level combination matrix A (<= P4 nonzeros per row) is built with
    iota compares and applied with a bf16 MXU matmul; heads write their channel
    slice directly (no lane concatenate).
    """
    o_ref = refs[-1]
    tq, c = o_ref.shape[1], o_ref.shape[2]
    d = c // n_heads
    for h in range(n_heads):
        acc = jnp.zeros((tq, d), jnp.float32)
        for l in range(n_levels):
            idx_ref, w_ref, v_ref = refs[3 * l], refs[3 * l + 1], refs[3 * l + 2]
            sl = v_ref.shape[1]
            s_iota = jax.lax.broadcasted_iota(jnp.int32, (tq, sl), 1)
            idx_h = idx_ref[0, h]                         # (Tq, P4)
            w_h = w_ref[0, h]                             # (Tq, P4)
            a = jnp.zeros((tq, sl), jnp.float32)
            for j in range(idx_h.shape[-1]):              # P4 corners, static unroll
                a = a + jnp.where(idx_h[:, j:j + 1] == s_iota, w_h[:, j:j + 1], 0.0)
            acc = acc + jnp.dot(a.astype(jnp.bfloat16), v_ref[0, :, h * d:(h + 1) * d],
                                preferred_element_type=jnp.float32)
        o_ref[0, :, h * d:(h + 1) * d] = acc.astype(o_ref.dtype)


# ----------------------------------------------------------------------------
# kernel wrappers
# ----------------------------------------------------------------------------
def pallas_linear(x, w, b, row_mask=None, out_dtype=jnp.float32):
    outs = [(w.shape[1], out_dtype)]
    if row_mask is None:
        return _row_call(_linear_kernel, [x], [w, b], outs)
    return _row_call(_linear_mask_kernel, [x, row_mask], [w, b], outs)


def pallas_qproj(q, pos, w, b, *, n_off, n_attn, lp):
    """Fused (q+pos) projection + per-head softmax; one lane-dense output, split here."""
    w_real = n_off + n_attn
    w_tot = _round_up(w_real, 128)
    pad_c = w_tot - w.shape[1]
    w_p = jnp.pad(w, ((0, 0), (0, pad_c))) if pad_c else w
    b_p = jnp.pad(b, ((0, 0), (0, pad_c))) if pad_c else b
    col = jnp.arange(w_tot)
    attn_col = (col >= n_off) & (col < w_real)
    is_attn = attn_col.astype(jnp.float32)[None, :]                      # (1, Wtot)
    head = jnp.where(attn_col, (col - n_off) // lp, -1)
    seg = ((head[:, None] == head[None, :]) & (head[:, None] >= 0)).astype(jnp.float32)
    kernel = functools.partial(_qproj_kernel, has_pos=pos is not None)
    row_args = [q] if pos is None else [q, pos]
    out = _row_call(kernel, row_args, [w_p, b_p, is_attn, seg], [(w_tot, jnp.float32)])
    return out[:, :n_off], out[:, n_off:w_real]


def pallas_out_add_ln(a, r, w, b, g, beta):
    return _row_call(_out_add_ln_kernel, [a, r], [w, b, g, beta],
                     [(w.shape[1], jnp.bfloat16)])


def pallas_ffn(x, w1, b1, w2, b2, g, beta):
    return _row_call(_ffn_kernel, [x], [w1, b1, w2, b2, g, beta],
                     [(w2.shape[1], jnp.bfloat16)])


def pallas_deform_core(idx_levels, w_levels, value_levels, n_heads, max_q_tile=None):
    """idx/w per level: (B, H, Lq, P4); value per level: (B, Sl, C) bf16 -> (B, Lq, C) bf16."""
    if max_q_tile is None:
        max_q_tile = _MAX_Q_TILE
    B, H, Lq, P4 = idx_levels[0].shape
    C = value_levels[0].shape[-1]
    L = len(idx_levels)
    tile_q = _pick_tile(Lq, max_q_tile)
    lq_p = _round_up(Lq, tile_q)
    if lq_p != Lq:
        pad = ((0, 0), (0, 0), (0, lq_p - Lq), (0, 0))
        idx_levels = [jnp.pad(a, pad) for a in idx_levels]   # padded weight 0 -> no effect
        w_levels = [jnp.pad(a, pad) for a in w_levels]
    nq = lq_p // tile_q

    # Fold (batch, q-tile) into ONE parallel grid axis so both v7x TensorCores get work
    # even when B == 1; q varies fastest so the per-batch value blocks stay resident.
    def qw_map(i):
        return (i // nq, 0, i % nq, 0)

    def val_map(i):
        return (i // nq, 0, 0)

    def out_map(i):
        return (i // nq, i % nq, 0)

    in_specs, inputs = [], []
    for l in range(L):
        sl = value_levels[l].shape[1]
        in_specs += [pl.BlockSpec((1, H, tile_q, P4), qw_map),
                     pl.BlockSpec((1, H, tile_q, P4), qw_map),
                     pl.BlockSpec((1, sl, C), val_map)]
        inputs += [idx_levels[l], w_levels[l], value_levels[l]]

    kernel = functools.partial(_deform_gather_kernel, n_heads=n_heads, n_levels=L)
    out = pl.pallas_call(
        kernel,
        grid=(B * nq,),
        out_shape=jax.ShapeDtypeStruct((B, lq_p, C), jnp.bfloat16),
        in_specs=in_specs,
        out_specs=pl.BlockSpec((1, tile_q, C), out_map),
        compiler_params=_CP,
    )(*inputs)
    return out[:, :Lq]


# ----------------------------------------------------------------------------
# MS-Deformable attention
# ----------------------------------------------------------------------------
def _build_gather_tables(sampling_locations, attn, spatial_shapes_list):
    """Per-level bilinear-corner index/weight tables (level-LOCAL flat indices).

    Emulates F.grid_sample(..., bilinear, padding_mode='zeros', align_corners=False):
    pixel coord = loc * size - 0.5; out-of-range corners get weight 0.
    Returns lists of idx_l / w_l with shape (B, H, Lq, P*4).
    """
    B, Lq, H, L, P, _ = sampling_locations.shape
    idx_levels, w_levels = [], []
    for lvl, (H_, W_) in enumerate(spatial_shapes_list):
        loc = sampling_locations[:, :, :, lvl]                 # (B, Lq, H, P, 2)
        a = attn[:, :, :, lvl]                                 # (B, Lq, H, P)
        x = loc[..., 0] * W_ - 0.5
        y = loc[..., 1] * H_ - 0.5
        x0 = jnp.floor(x)
        y0 = jnp.floor(y)
        lx = x - x0
        ly = y - y0
        x0i = x0.astype(jnp.int32)
        y0i = y0.astype(jnp.int32)
        idx_parts, w_parts = [], []
        for dx, dy, bw in ((0, 0, (1 - lx) * (1 - ly)),
                           (1, 0, lx * (1 - ly)),
                           (0, 1, (1 - lx) * ly),
                           (1, 1, lx * ly)):
            xi = x0i + dx
            yi = y0i + dy
            valid = ((xi >= 0) & (xi < W_) & (yi >= 0) & (yi < H_)).astype(jnp.float32)
            # NOTE: invalid corners may alias an in-range row of this level; correctness
            # relies on the weight being zeroed here -- do NOT drop the `valid` multiply.
            idx_parts.append(yi * W_ + xi)                     # level-local flat index
            w_parts.append(bw * valid * a)
        idx_l = jnp.stack(idx_parts, axis=-1).reshape(B, Lq, H, P * 4).transpose(0, 2, 1, 3)
        w_l = jnp.stack(w_parts, axis=-1).reshape(B, Lq, H, P * 4).transpose(0, 2, 1, 3)
        idx_levels.append(idx_l.astype(jnp.int32))
        w_levels.append(w_l.astype(jnp.float32))
    return idx_levels, w_levels


def _split_value_levels(value, spatial_shapes_list):
    levels, start = [], 0
    for (H_, W_) in spatial_shapes_list:
        n = H_ * W_
        v = value[:, start:start + n]
        sp = _round_up(n, 16)
        if sp != n:
            v = jnp.pad(v, ((0, 0), (0, sp - n), (0, 0)))
        levels.append(v)
        start += n
    return levels


def ms_deform_attn(p, q_in, pos, reference_points, input_flatten, spatial_shapes_list,
                   padding_mask=None, n_heads=4, n_levels=2, n_points=4):
    B, Lq, C = q_in.shape
    _, Lin, _ = input_flatten.shape
    H, L, P = n_heads, n_levels, n_points
    n_off = H * L * P * 2
    n_attn = H * L * P

    # value projection (bf16 out) with fused padding-mask zeroing
    x_v = input_flatten.reshape(B * Lin, C)
    if padding_mask is not None:
        keep = 1.0 - padding_mask.reshape(B * Lin, 1).astype(jnp.float32)
        value = pallas_linear(x_v, p['Wv'], p['bv'], row_mask=keep, out_dtype=jnp.bfloat16)
    else:
        value = pallas_linear(x_v, p['Wv'], p['bv'], out_dtype=jnp.bfloat16)
    value = value.reshape(B, Lin, C)

    # fused (q + pos) -> [offsets | logits] projection -> per-head softmax (lane-dense)
    off, attn = pallas_qproj(q_in.reshape(B * Lq, C),
                             None if pos is None else pos.reshape(B * Lq, C),
                             p['Wq'], p['bq'], n_off=n_off, n_attn=n_attn, lp=L * P)
    sampling_offsets = off.reshape(B, Lq, H, L, P, 2)
    attn = attn.reshape(B, Lq, H, L, P)

    shapes = jnp.asarray(spatial_shapes_list, dtype=jnp.float32)          # (L, 2) = (H, W)
    offset_normalizer = jnp.stack([shapes[:, 1], shapes[:, 0]], axis=-1)  # (L, 2) = (W, H)
    sampling_locations = (reference_points[:, :, None, :, None, :]
                          + sampling_offsets / offset_normalizer[None, None, None, :, None, :])

    # bilinear gather + attention-weighted reduce as a per-level Pallas MXU kernel
    idx_levels, w_levels = _build_gather_tables(sampling_locations, attn, spatial_shapes_list)
    value_levels = _split_value_levels(value, spatial_shapes_list)
    attn_out = pallas_deform_core(idx_levels, w_levels, value_levels, n_heads=H)  # (B,Lq,C) bf16
    return attn_out, sampling_locations, attn


# ----------------------------------------------------------------------------
# Encoder layer + encoder forward
# ----------------------------------------------------------------------------
def encoder_layer_forward(p, src, pos, reference_points, spatial_shapes_list,
                          padding_mask=None, tgt=None, n_heads=4, n_levels=2, n_points=4):
    q_in = src if tgt is None else tgt
    # TODO(synk): in the non-sparse path Wv and Wq read the same rows and could be fused
    # into one kernel; kept separate here since the sparse path gathers different rows.
    attn_out, sampling_locations, attn_weights = ms_deform_attn(
        p, q_in, pos, reference_points, src, spatial_shapes_list, padding_mask,
        n_heads=n_heads, n_levels=n_levels, n_points=n_points)
    B, Lq, C = q_in.shape
    x = pallas_out_add_ln(attn_out.reshape(B * Lq, C), q_in.reshape(B * Lq, C),
                          p['Wout'], p['bout'], p['ln1_g'], p['ln1_b'])
    x = pallas_ffn(x, p['W1'], p['b1'], p['W2'], p['b2'], p['ln2_g'], p['ln2_b'])
    return x.reshape(B, Lq, C), sampling_locations, attn_weights


def get_reference_points(spatial_shapes_list, valid_ratios):
    ref_list = []
    for lvl, (H_, W_) in enumerate(spatial_shapes_list):
        ys = jnp.linspace(0.5, H_ - 0.5, H_, dtype=jnp.float32)
        xs = jnp.linspace(0.5, W_ - 0.5, W_, dtype=jnp.float32)
        ref_y, ref_x = jnp.meshgrid(ys, xs, indexing='ij')
        ref_y = ref_y.reshape(-1)[None] / (valid_ratios[:, None, lvl, 1] * H_)
        ref_x = ref_x.reshape(-1)[None] / (valid_ratios[:, None, lvl, 0] * W_)
        ref_list.append(jnp.stack((ref_x, ref_y), -1))
    reference_points = jnp.concatenate(ref_list, axis=1)
    reference_points = reference_points[:, :, None] * valid_ratios[:, None]
    return reference_points  # (B, N, L, 2)


def deformable_transformer_encoder_forward(params, src, spatial_shapes_list, level_start_index,
                                           valid_ratios, pos=None, padding_mask=None,
                                           topk_inds=None, sparse_token_nums=None,
                                           n_heads=4, n_levels=2, n_points=4):
    del level_start_index  # level splitting is done with the static spatial_shapes_list
    output = src
    sparsified = topk_inds is not None
    reference_points = get_reference_points(spatial_shapes_list, valid_ratios)
    if sparsified:
        B, N, S, P2 = reference_points.shape
        reference_points = jnp.take_along_axis(
            reference_points.reshape(B, N, S * P2), topk_inds[..., None], axis=1
        ).reshape(B, -1, S, P2)
        tgt = jnp.take_along_axis(output, topk_inds[..., None], axis=1)
        pos = jnp.take_along_axis(pos, topk_inds[..., None], axis=1)
    else:
        tgt = None

    sampling_locations_all = []
    attn_weights_all = []
    for p in params['layers']:
        tgt_out, sl, aw = encoder_layer_forward(
            p, output, pos, reference_points, spatial_shapes_list, padding_mask,
            tgt=tgt if sparsified else None,
            n_heads=n_heads, n_levels=n_levels, n_points=n_points)
        sampling_locations_all.append(sl)
        attn_weights_all.append(aw)
        if sparsified:
            if sparse_token_nums is None:
                batch_idx = jnp.arange(output.shape[0])[:, None]
                output = output.at[batch_idx, topk_inds].set(tgt_out.astype(output.dtype))
            else:
                # TODO(synk): per-sample variable-length scatter (sparse_token_nums) not implemented
                raise NotImplementedError("sparse_token_nums path not implemented")
            tgt = tgt_out
        else:
            output = tgt_out

    return (output.astype(jnp.float32),
            jnp.stack(sampling_locations_all, axis=1),
            jnp.stack(attn_weights_all, axis=1))


# ----------------------------------------------------------------------------
# Deterministic parameter init (shapes follow DeformableTransformerEncoderLayer)
# Matmul weights stored in bf16; biases / LN params in f32.
# ----------------------------------------------------------------------------
def init_layer_params(key, c, d_ffn, h, l, p):
    ks = jax.random.split(key, 7)
    s = 0.05

    def w(k, shape):
        return jax.random.normal(k, shape, jnp.float32) * s

    n_off = h * l * p * 2
    n_attn = h * l * p
    # TODO(synk): Deformable-DETR's _reset_parameters grid init for sampling offsets is not reproduced.
    Wq = jnp.concatenate([w(ks[1], (c, n_off)), w(ks[3], (c, n_attn))], axis=1)
    bq = jnp.concatenate([w(ks[2], (1, n_off)), jnp.zeros((1, n_attn), jnp.float32)], axis=1)
    return {
        'Wv': w(ks[0], (c, c)).astype(jnp.bfloat16), 'bv': jnp.zeros((1, c), jnp.float32),
        'Wq': Wq.astype(jnp.bfloat16), 'bq': bq,
        'Wout': w(ks[4], (c, c)).astype(jnp.bfloat16), 'bout': jnp.zeros((1, c), jnp.float32),
        'ln1_g': jnp.ones((1, c), jnp.float32), 'ln1_b': jnp.zeros((1, c), jnp.float32),
        'W1': w(ks[5], (c, d_ffn)).astype(jnp.bfloat16), 'b1': jnp.zeros((1, d_ffn), jnp.float32),
        'W2': w(ks[6], (d_ffn, c)).astype(jnp.bfloat16), 'b2': jnp.zeros((1, c), jnp.float32),
        'ln2_g': jnp.ones((1, c), jnp.float32), 'ln2_b': jnp.zeros((1, c), jnp.float32),
    }


if __name__ == "__main__":
    B, C, H_HEADS, L_LEVELS, P_POINTS, D_FFN, NUM_LAYERS = 2, 32, 4, 2, 4, 64, 2
    spatial_shapes_list = [(8, 8), (4, 4)]
    N = sum(h * w for h, w in spatial_shapes_list)          # 80 tokens
    level_start_index = jnp.array([0, 64], dtype=jnp.int32)
    K = 16                                                   # top-k sparse tokens

    key = jax.random.PRNGKey(0)
    k_src, k_pos, k_vr, k_top, k_par = jax.random.split(key, 5)
    src = jax.random.normal(k_src, (B, N, C), jnp.float32)
    pos = jax.random.normal(k_pos, (B, N, C), jnp.float32) * 0.1
    valid_ratios = jax.random.uniform(k_vr, (B, L_LEVELS, 2), jnp.float32, 0.8, 1.0)
    topk_inds = jnp.stack(
        [jax.random.permutation(jax.random.fold_in(k_top, b), N)[:K] for b in range(B)]
    ).astype(jnp.int32)

    layer_keys = jax.random.split(k_par, NUM_LAYERS)
    params = {'layers': [init_layer_params(layer_keys[i], C, D_FFN, H_HEADS, L_LEVELS, P_POINTS)
                         for i in range(NUM_LAYERS)]}

    out, sampling_locations_all, attn_weights_all = deformable_transformer_encoder_forward(
        params, src, spatial_shapes_list, level_start_index, valid_ratios,
        pos=pos, padding_mask=None, topk_inds=topk_inds, sparse_token_nums=None,
        n_heads=H_HEADS, n_levels=L_LEVELS, n_points=P_POINTS)

    jax.block_until_ready((out, sampling_locations_all, attn_weights_all))
    assert out.shape == (B, N, C)
    assert sampling_locations_all.shape == (B, NUM_LAYERS, K, H_HEADS, L_LEVELS, P_POINTS, 2)
    assert attn_weights_all.shape == (B, NUM_LAYERS, K, H_HEADS, L_LEVELS, P_POINTS)
    assert bool(jnp.all(jnp.isfinite(out)))
    print("KERNEL_OK")
</pallas_src>

<mosaic_0001>
module attributes {stable_mosaic.version = 11 : i64} {
  func.func @_linear_kernel(%arg0: i32, %arg1: memref<160x32xf32, #tpu.memory_space<vmem>>, %arg2: memref<32x32xbf16, #tpu.memory_space<vmem>>, %arg3: memref<1x32xf32, #tpu.memory_space<vmem>>, %arg4: memref<160x32xbf16, #tpu.memory_space<vmem>>) attributes {dimension_semantics = [#tpu.dimension_semantics<parallel>], iteration_bounds = array<i64: 1>, scalar_prefetch = 0 : i64, scratch_operands = 0 : i64, tpu.core_type = #tpu.core_type<tc>, window_params = [{transform_indices = @transform_0, window_bounds = array<i64: 160, 32>}, {pipeline_mode = #tpu.pipeline_mode<synchronous>, transform_indices = @transform_1, window_bounds = array<i64: 32, 32>}, {pipeline_mode = #tpu.pipeline_mode<synchronous>, transform_indices = @transform_2, window_bounds = array<i64: 1, 32>}, {transform_indices = @transform_3, window_bounds = array<i64: 160, 32>}]} {
    %c0 = arith.constant 0 : index
    %c0_0 = arith.constant 0 : index
    %0 = vector.load %arg1[%c0, %c0_0] : memref<160x32xf32, #tpu.memory_space<vmem>>, vector<160x32xf32>
    %1 = arith.truncf %0 : vector<160x32xf32> to vector<160x32xbf16>
    %c0_1 = arith.constant 0 : index
    %c0_2 = arith.constant 0 : index
    %2 = vector.load %arg2[%c0_1, %c0_2] : memref<32x32xbf16, #tpu.memory_space<vmem>>, vector<32x32xbf16>
    %cst = arith.constant dense<0.000000e+00> : vector<160x32xf32>
    %3 = tpu.matmul %1, %2, %cst {dimension_numbers = #tpu.dot_dimension_numbers<[1], [0], [0], [1], [0, 0, 1, 1], [], []>} : vector<160x32xbf16>, vector<32x32xbf16>, vector<160x32xf32> -> vector<160x32xf32>
    %c0_3 = arith.constant 0 : index
    %c0_4 = arith.constant 0 : index
    %4 = vector.load %arg3[%c0_3, %c0_4] : memref<1x32xf32, #tpu.memory_space<vmem>>, vector<1x32xf32>
    %5 = vector.broadcast %4 : vector<1x32xf32> to vector<160x32xf32>
    %6 = arith.addf %3, %5 : vector<160x32xf32>
    %7 = arith.truncf %6 : vector<160x32xf32> to vector<160x32xbf16>
    %c0_5 = arith.constant 0 : index
    %c0_6 = arith.constant 0 : index
    %8 = vector.load %arg4[%c0_5, %c0_6] : memref<160x32xbf16, #tpu.memory_space<vmem>>, vector<160x32xbf16>
    tpu.vector_store %arg4[%c0_5, %c0_6], %7 {strides = array<i32>} : memref<160x32xbf16, #tpu.memory_space<vmem>>, vector<160x32xbf16>,
    return
  }
  func.func @transform_0(%arg0: i32) -> (i32, i32) {
    %c0_i32 = arith.constant 0 : i32
    %c0_i32_0 = arith.constant 0 : i32
    return %arg0, %c0_i32 : i32, i32
  }
  func.func @transform_1(%arg0: i32) -> (i32, i32) {
    %c0_i32 = arith.constant 0 : i32
    %c0_i32_0 = arith.constant 0 : i32
    %c0_i32_1 = arith.constant 0 : i32
    return %c0_i32, %c0_i32_0 : i32, i32
  }
  func.func @transform_2(%arg0: i32) -> (i32, i32) {
    %c0_i32 = arith.constant 0 : i32
    %c0_i32_0 = arith.constant 0 : i32
    %c0_i32_1 = arith.constant 0 : i32
    return %c0_i32, %c0_i32_0 : i32, i32
  }
  func.func @transform_3(%arg0: i32) -> (i32, i32) {
    %c0_i32 = arith.constant 0 : i32
    %c0_i32_0 = arith.constant 0 : i32
    return %arg0, %c0_i32 : i32, i32
  }
}

</mosaic_0001>

<bundles_post_ra>
// kernel: tpu_custom_call.1
= control target key start
LH: loop header
LB: loop body
LE: loop exit
PB: predicated region body
PF: predicated region fallthrough
CT: control target
= control target key end

     0   :  { %vm68_vm0 = vcmask 261120   ;;  %vm292_vm1 = vcmask 257024   ;;  %s613_s1 = inlined_call_operand.vmem [shape: bf16[32,32], index: 1, kind: input, shape index: {}]   ;;  %s614_s0 = inlined_call_operand.vmem [shape: f32[160,32], index: 0, kind: input, shape index: {}]   ;;  %s615_s2 = inlined_call_operand.vmem [shape: f32[1,32], index: 2, kind: input, shape index: {}]   ;;  %s616_s3 = inlined_call_operand.vmem [shape: bf16[160,32], index: 3, kind: output, shape index: {}]  }
   0x1   :  { %v410_v0 = vld [vmem:[%s613_s1 + $0x8] sm:$0xff]   ;;  %v411_v1 = vld [vmem:[%s613_s1] sm:$0xff]   ;;  %v17_v4 = vld [vmem:[%s614_s0 + $0x10] sm:$0xff] }
   0x2   :  { %382 = vmatprep.subr.bf16.mxu0 %v410_v0  ;;  %406 = vmatprep.subr.bf16.mxu1 %v410_v0  ;;  %v15_v2 = vld [vmem:[%s614_s0] sm:$0xff]  ;;  %v16_v3 = vld [vmem:[%s614_s0 + $0x8] sm:$0xff]  ;;  %v18_v6 = vld [vmem:[%s614_s0 + $0x18] sm:$0xff] }
   0x3   :  { %383 = vmatpush3.bf16.msra.mxu0 %v410_v0  ;;  %408 = vmatpush3.bf16.msra.mxu1 %v410_v0  ;;  %v35_v5 = vpack.c.bf16 %v16_v3, %v15_v2  ;;  %v27_v7 = vld [vmem:[%s614_s0 + $0x60] sm:$0xff]  ;;  %v28_v8 = vld [vmem:[%s614_s0 + $0x68] sm:$0xff]  ;;  %v29_v10 = vld [vmem:[%s614_s0 + $0x70] sm:$0xff]  ;;  %v36_v14 = vpack.c.bf16 %v18_v6, %v17_v4 }
   0x4   :  { %384 = vmatprep.subr.bf16.mxu0 %v411_v1  ;;  %407 = vmatprep.subr.bf16.mxu1 %v411_v1  ;;  %v41_v9 = vpack.c.bf16 %v28_v8, %v27_v7  ;;  %v30_v11 = vld [vmem:[%s614_s0 + $0x78] sm:$0xff]  ;;  %v19_v12 = vld [vmem:[%s614_s0 + $0x20] sm:$0xff]  ;;  %v20_v13 = vld [vmem:[%s614_s0 + $0x28] sm:$0xff] }
   0x5   :  { %386 = vmatprep.mubr.msk.bf16.mxu0 %vm68_vm0, %v35_v5  ;;  %v42_v15 = vpack.c.bf16 %v30_v11, %v29_v10  ;;  %v31_v16 = vld [vmem:[%s614_s0 + $0x80] sm:$0xff]  ;;  %v32_v17 = vld [vmem:[%s614_s0 + $0x88] sm:$0xff]  ;;  %v37_v18 = vpack.c.bf16 %v20_v13, %v19_v12  ;;  %v21_v20 = vld [vmem:[%s614_s0 + $0x30] sm:$0xff] }
   0x6   :  { %398 = vmatprep.mubr.msk.bf16.mxu1 %vm68_vm0, %v41_v9  ;;  %v43_v19 = vpack.c.bf16 %v32_v17, %v31_v16  ;;  %v22_v21 = vld [vmem:[%s614_s0 + $0x38] sm:$0xff]  ;;  %v33_v22 = vld [vmem:[%s614_s0 + $0x90] sm:$0xff]  ;;  %v23_v24 = vld [vmem:[%s614_s0 + $0x40] sm:$0xff] }
   0x7   :  { %385 = vmatpush3.bf16.msra.mxu0 %v411_v1  ;;  %409 = vmatpush3.bf16.msra.mxu1 %v411_v1  ;;  %v34_v23 = vld [vmem:[%s614_s0 + $0x98] sm:$0xff]  ;;  %v24_v25 = vld [vmem:[%s614_s0 + $0x48] sm:$0xff]  ;;  %v38_v26 = vpack.c.bf16 %v22_v21, %v21_v20  ;;  %v25_v29 = vld [vmem:[%s614_s0 + $0x50] sm:$0xff] }
   0x8   :  { %v44_v27 = vpack.c.bf16 %v34_v23, %v33_v22  ;;  %v39_v28 = vpack.c.bf16 %v24_v25, %v23_v24  ;;  %v26_v30 = vld [vmem:[%s614_s0 + $0x58] sm:$0xff]  ;;  %v511_v32 = vld [vmem:[%s615_s2] ss:$0 sm:$0xff] }
   0x9   :  { %v40_v31 = vpack.c.bf16 %v26_v30, %v25_v29 }
   0xa   :  { %387 = vmatmul.mubr.msk.bf16.vlgmr.msra.gmra.mxu0 %vm68_vm0, %v36_v14  ;;  %399 = vmatmul.mubr.msk.bf16.vlgmr.msra.gmra.mxu1 %vm68_vm0, %v42_v15 }
   0xb   :  { %390 = vmatprep.mubr.msk.bf16.mxu0 %vm68_vm0, %v37_v18  ;;  %402 = vmatprep.mubr.msk.bf16.mxu1 %vm68_vm0, %v43_v19 }
  0x12   :  { %391 = vmatmul.mubr.msk.bf16.gmra.mxu0 %vm68_vm0, %v38_v26  ;;  %403 = vmatmul.mubr.msk.bf16.gmra.mxu1 %vm68_vm0, %v44_v27 }
  0x13   :  { %394 = vmatprep.mubr.msk.bf16.mxu0 %vm68_vm0, %v39_v28 }
  0x1a   :  { %395 = vmatmul.mubr.msk.bf16.gmra.mxu0 %vm68_vm0, %v40_v31 }
  0xca   :  { %v388_v33 = vpop.f32.mrf.mxu0  ;;  %v400_v34 = vpop.f32.mrf.mxu1 }
  0xcb   :  { %v142_v35 = vadd.f32 %v388_v33, %v511_v32  ;;  %v190_v36 = vadd.f32 %v400_v34, %v511_v32 }
  0xcc   :  { %v133_v37 = vpop.f32.mrf.mxu0  ;;  %v181_v38 = vpop.f32.mrf.mxu1 }
  0xcd   :  { %v352_v39 = vpack.c.bf16 %v142_v35, %v142_v35  ;;  %v134_v40 = vadd.f32 %v511_v32, %v133_v37  ;;  %v364_v41 = vpack.c.bf16 %v190_v36, %v190_v36  ;;  %v182_v42 = vadd.f32 %v511_v32, %v181_v38 }
  0xce   :  { %v389_v43 = vpop.f32.mrf.mxu0  ;;  %v401_v44 = vpop.f32.mrf.mxu1 }
  0xcf   :  { %295 = vst.msk [vmem:[%s616_s3 + $0x8] sm:$0xf] %vm292_vm1, %v352_v39  ;;  %v350_v45 = vpack.c.bf16 %v134_v40, %v134_v40  ;;  %307 = vst.msk [vmem:[%s616_s3 + $0x38] sm:$0xf] %vm292_vm1, %v364_v41  ;;  %v145_v46 = vadd.f32 %v389_v43, %v511_v32  ;;  %v362_v47 = vpack.c.bf16 %v182_v42, %v182_v42 }
  0xd0   :  { %v193_v48 = vadd.f32 %v401_v44, %v511_v32  ;;  %v136_v49 = vpop.f32.mrf.mxu0  ;;  %v184_v50 = vpop.f32.mrf.mxu1 }
  0xd1   :  { %293 = vst.msk [vmem:[%s616_s3] sm:$0xf] %vm292_vm1, %v350_v45  ;;  %v353_v51 = vpack.c.bf16 %v145_v46, %v145_v46  ;;  %305 = vst.msk [vmem:[%s616_s3 + $0x30] sm:$0xf] %vm292_vm1, %v362_v47  ;;  %v137_v52 = vadd.f32 %v511_v32, %v136_v49  ;;  %v185_v54 = vadd.f32 %v511_v32, %v184_v50 }
  0xd2   :  { %v365_v53 = vpack.c.bf16 %v193_v48, %v193_v48  ;;  %v392_v55 = vpop.f32.mrf.mxu0  ;;  %v404_v56 = vpop.f32.mrf.mxu1 }
  0xd3   :  { %296 = vst.msk [vmem:[%s616_s3 + $0xc] sm:$0xf] %vm292_vm1, %v353_v51  ;;  %v351_v57 = vpack.c.bf16 %v137_v52, %v137_v52  ;;  %v158_v58 = vadd.f32 %v392_v55, %v511_v32  ;;  %v363_v59 = vpack.c.bf16 %v185_v54, %v185_v54  ;;  %v206_v60 = vadd.f32 %v404_v56, %v511_v32 }
  0xd4   :  { %308 = vst.msk [vmem:[%s616_s3 + $0x3c] sm:$0xf] %vm292_vm1, %v365_v53  ;;  %v149_v61 = vpop.f32.mrf.mxu0  ;;  %v197_v62 = vpop.f32.mrf.mxu1 }
  0xd5   :  { %294 = vst.msk [vmem:[%s616_s3 + $0x4] sm:$0xf] %vm292_vm1, %v351_v57  ;;  %v356_v63 = vpack.c.bf16 %v158_v58, %v158_v58  ;;  %306 = vst.msk [vmem:[%s616_s3 + $0x34] sm:$0xf] %vm292_vm1, %v363_v59  ;;  %v150_v0 = vadd.f32 %v511_v32, %v149_v61  ;;  %v368_v1 = vpack.c.bf16 %v206_v60, %v206_v60 }
  0xd6   :  { %v198_v2 = vadd.f32 %v511_v32, %v197_v62  ;;  %v393_v3 = vpop.f32.mrf.mxu0  ;;  %v405_v4 = vpop.f32.mrf.mxu1 }
  0xd7   :  { %299 = vst.msk [vmem:[%s616_s3 + $0x18] sm:$0xf] %vm292_vm1, %v356_v63  ;;  %v354_v5 = vpack.c.bf16 %v150_v0, %v150_v0  ;;  %311 = vst.msk [vmem:[%s616_s3 + $0x48] sm:$0xf] %vm292_vm1, %v368_v1  ;;  %v161_v6 = vadd.f32 %v393_v3, %v511_v32  ;;  %v209_v8 = vadd.f32 %v405_v4, %v511_v32 }
  0xd8   :  { %v366_v7 = vpack.c.bf16 %v198_v2, %v198_v2  ;;  %v152_v9 = vpop.f32.mrf.mxu0  ;;  %v200_v10 = vpop.f32.mrf.mxu1 }
  0xd9   :  { %297 = vst.msk [vmem:[%s616_s3 + $0x10] sm:$0xf] %vm292_vm1, %v354_v5  ;;  %v357_v11 = vpack.c.bf16 %v161_v6, %v161_v6  ;;  %v153_v12 = vadd.f32 %v511_v32, %v152_v9  ;;  %v369_v13 = vpack.c.bf16 %v209_v8, %v209_v8  ;;  %v201_v14 = vadd.f32 %v511_v32, %v200_v10 }
  0xda   :  { %309 = vst.msk [vmem:[%s616_s3 + $0x40] sm:$0xf] %vm292_vm1, %v366_v7  ;;  %v396_v15 = vpop.f32.mrf.mxu0 }
  0xdb   :  { %300 = vst.msk [vmem:[%s616_s3 + $0x1c] sm:$0xf] %vm292_vm1, %v357_v11  ;;  %v355_v16 = vpack.c.bf16 %v153_v12, %v153_v12  ;;  %312 = vst.msk [vmem:[%s616_s3 + $0x4c] sm:$0xf] %vm292_vm1, %v369_v13  ;;  %v174_v17 = vadd.f32 %v396_v15, %v511_v32  ;;  %v367_v18 = vpack.c.bf16 %v201_v14, %v201_v14 }
  0xdc   :  { %v165_v19 = vpop.f32.mrf.mxu0 }
  0xdd   :  { %298 = vst.msk [vmem:[%s616_s3 + $0x14] sm:$0xf] %vm292_vm1, %v355_v16  ;;  %v360_v20 = vpack.c.bf16 %v174_v17, %v174_v17  ;;  %310 = vst.msk [vmem:[%s616_s3 + $0x44] sm:$0xf] %vm292_vm1, %v367_v18  ;;  %v166_v21 = vadd.f32 %v511_v32, %v165_v19 }
  0xde   :  { %v397_v22 = vpop.f32.mrf.mxu0 }
  0xdf   :  { %303 = vst.msk [vmem:[%s616_s3 + $0x28] sm:$0xf] %vm292_vm1, %v360_v20  ;;  %v358_v23 = vpack.c.bf16 %v166_v21, %v166_v21  ;;  %v177_v24 = vadd.f32 %v397_v22, %v511_v32 }
  0xe0   :  { %v168_v25 = vpop.f32.mrf.mxu0 }
  0xe1   :  { %301 = vst.msk [vmem:[%s616_s3 + $0x20] sm:$0xf] %vm292_vm1, %v358_v23  ;;  %v361_v26 = vpack.c.bf16 %v177_v24, %v177_v24  ;;  %v169_v27 = vadd.f32 %v511_v32, %v168_v25 }
  0xe3   :  { %304 = vst.msk [vmem:[%s616_s3 + $0x2c] sm:$0xf] %vm292_vm1, %v361_v26  ;;  %v359_v28 = vpack.c.bf16 %v169_v27, %v169_v27 }
  0xe5   :  { %302 = vst.msk [vmem:[%s616_s3 + $0x24] sm:$0xf] %vm292_vm1, %v359_v28 }

</bundles_post_ra>
